<compile_context>
chip_gen: v6e
topology: v6e:2x2x1
jax: 0.10.0
libtpu: 0.0.40
codegen_flags: <defaults>
</compile_context>

<pallas_src>
import functools

import jax
import jax.numpy as jnp
from jax.experimental import pallas as pl
from jax.experimental.pallas import tpu as pltpu

_LANE_WIDTHS = (1024, 512, 256, 128)    # lane-dense candidates (multiples of 128)
_TARGET_BLOCK_BYTES = 4 * 1024 * 1024   # ~4 MiB per block
_VMEM_LIMIT_BYTES = 32 * 1024 * 1024    # explicit scoped-VMEM limit (safe on all gens)
_SMALL_INPUT_ELEMS = 256 * 1024         # below ~1 MiB f32, XLA multiply wins


def _scale_kernel(x_ref, o_ref, *, scale: float):
    # `scale` is a static Python float folded into the kernel body.
    x = x_ref[...].astype(jnp.float32)
    o_ref[...] = (x * scale).astype(o_ref.dtype)


def _round_up(v: int, m: int) -> int:
    return ((v + m - 1) // m) * m


def uniform_box_warp(coordinates: jax.Array, sidelength: float, *,
                     force_pallas: bool = False,
                     max_block_bytes: int = _TARGET_BLOCK_BYTES) -> jax.Array:
    """Pallas implementation of UniformBoxWarp.forward."""
    scale_factor = 2.0 / float(sidelength)
    orig_shape = coordinates.shape
    orig_dtype = coordinates.dtype
    n = coordinates.size

    def _xla_fallback():
        return (coordinates * scale_factor).astype(orig_dtype)

    # Empty / non-float inputs: nothing worth launching a kernel for.
    if n == 0 or not jnp.issubdtype(orig_dtype, jnp.floating):
        return _xla_fallback()
    # Small-input fallback: launch overhead dominates below ~1 MiB.
    if n < _SMALL_INPUT_ELEMS and not force_pallas:
        return _xla_fallback()

    # Pick the widest lane-dense last dim that divides n exactly (no pad).
    lanes = next((l for l in _LANE_WIDTHS if n % l == 0), None)
    if lanes is None:
        # A padded copy + final slice would triple HBM traffic; fused XLA is
        # strictly cheaper for this memory-bound elementwise op.
        return _xla_fallback()

    rows = n // lanes
    x2d = coordinates.reshape(rows, lanes)  # contiguous reshape: no copy

    itemsize = jnp.dtype(orig_dtype).itemsize
    max_tile_rows = max(8, (int(max_block_bytes) // (lanes * itemsize)) // 8 * 8)

    if rows <= max_tile_rows:
        # Single block == full array dims (legal even if rows % 8 != 0).
        # No forced split: on single-TC v5e/v6e a split is pure overhead.
        tile_rows = rows
    else:
        # Multi-block: prefer an even number of equal 8-row-aligned blocks so
        # both v7x TensorCores stay busy; harmless on single-TC chips.
        num_blocks = pl.cdiv(rows, max_tile_rows)
        if num_blocks % 2:
            num_blocks += 1
        tile_rows = _round_up(pl.cdiv(rows, num_blocks), 8)
    grid = (pl.cdiv(rows, tile_rows),)  # ragged last block handled by Pallas

    out2d = pl.pallas_call(
        functools.partial(_scale_kernel, scale=scale_factor),
        out_shape=jax.ShapeDtypeStruct((rows, lanes), orig_dtype),
        grid_spec=pl.GridSpec(
            grid=grid,
            in_specs=[pl.BlockSpec((tile_rows, lanes), lambda i: (i, 0))],
            out_specs=pl.BlockSpec((tile_rows, lanes), lambda i: (i, 0)),
        ),
        compiler_params=pltpu.CompilerParams(
            dimension_semantics=("parallel",),
            vmem_limit_bytes=_VMEM_LIMIT_BYTES,
        ),
        cost_estimate=pl.CostEstimate(
            flops=n, transcendentals=0, bytes_accessed=2 * n * itemsize),
    )(x2d)

    return out2d.reshape(orig_shape)


if __name__ == "__main__":
    sidelength = 0.24  # module __init__ arg; scale_factor = 2 / sidelength
    scale = 2.0 / sidelength

    # 1) Small NeRF-like shape; force the Pallas path (single full-array block).
    coords = jax.random.normal(jax.random.PRNGKey(0), (2, 512, 3), jnp.float32) * 10.0
    out = jax.block_until_ready(uniform_box_warp(coords, sidelength, force_pallas=True))
    assert out.shape == coords.shape and out.dtype == coords.dtype
    assert jnp.allclose(out, coords * scale, rtol=1e-6, atol=1e-6)

    # 2) Multi-block path with a ragged last block + balanced even-ish grid
    #    (tiny block budget only to exercise the tiling logic at small sizes).
    coords2 = jax.random.normal(jax.random.PRNGKey(1), (2, 13, 1024), jnp.float32)
    out2 = jax.block_until_ready(
        uniform_box_warp(coords2, sidelength, force_pallas=True,
                         max_block_bytes=32 * 1024))
    assert jnp.allclose(out2, coords2 * scale, rtol=1e-6, atol=1e-6)

    # 3) bf16 through the kernel (f32 multiply then downcast).
    coords3 = jax.random.normal(jax.random.PRNGKey(2), (4, 1024, 3),
                                jnp.float32).astype(jnp.bfloat16)
    out3 = jax.block_until_ready(uniform_box_warp(coords3, sidelength, force_pallas=True))
    ref3 = (coords3.astype(jnp.float32) * scale).astype(jnp.bfloat16)
    assert out3.dtype == jnp.bfloat16
    assert jnp.allclose(out3.astype(jnp.float32), ref3.astype(jnp.float32),
                        rtol=2e-2, atol=2e-2)

    # 4) Small / non-128-divisible input takes the XLA fallback.
    coords4 = jax.random.normal(jax.random.PRNGKey(3), (2, 7, 3), jnp.float32)
    out4 = jax.block_until_ready(uniform_box_warp(coords4, sidelength))
    assert jnp.allclose(out4, coords4 * scale, rtol=1e-6, atol=1e-6)

    print("KERNEL_OK")
</pallas_src>

<mosaic_0001>
module attributes {stable_mosaic.version = 11 : i64} {
  func.func @_scale_kernel(%arg0: i32, %arg1: memref<3x1024xf32, #tpu.memory_space<vmem>>, %arg2: memref<3x1024xf32, #tpu.memory_space<vmem>>) attributes {dimension_semantics = [#tpu.dimension_semantics<parallel>], iteration_bounds = array<i64: 1>, scalar_prefetch = 0 : i64, scratch_operands = 0 : i64, tpu.core_type = #tpu.core_type<tc>, window_params = [{transform_indices = @transform_0, window_bounds = array<i64: 3, 1024>}, {transform_indices = @transform_1, window_bounds = array<i64: 3, 1024>}]} {
    %c0 = arith.constant 0 : index
    %c0_0 = arith.constant 0 : index
    %0 = vector.load %arg1[%c0, %c0_0] : memref<3x1024xf32, #tpu.memory_space<vmem>>, vector<3x1024xf32>
    %cst = arith.constant 8.33333301 : f32
    %1 = vector.broadcast %cst : f32 to vector<3x1024xf32>
    %2 = arith.mulf %0, %1 : vector<3x1024xf32>
    %c0_1 = arith.constant 0 : index
    %c0_2 = arith.constant 0 : index
    %3 = vector.load %arg2[%c0_1, %c0_2] : memref<3x1024xf32, #tpu.memory_space<vmem>>, vector<3x1024xf32>
    tpu.vector_store %arg2[%c0_1, %c0_2], %2 {strides = array<i32>} : memref<3x1024xf32, #tpu.memory_space<vmem>>, vector<3x1024xf32>,
    return
  }
  func.func @transform_0(%arg0: i32) -> (i32, i32) {
    %c0_i32 = arith.constant 0 : i32
    %c0_i32_0 = arith.constant 0 : i32
    return %arg0, %c0_i32 : i32, i32
  }
  func.func @transform_1(%arg0: i32) -> (i32, i32) {
    %c0_i32 = arith.constant 0 : i32
    %c0_i32_0 = arith.constant 0 : i32
    return %arg0, %c0_i32 : i32, i32
  }
}

</mosaic_0001>

<bundles_post_ra>
// kernel: tpu_custom_call.1
= control target key start
LH: loop header
LB: loop body
LE: loop exit
PB: predicated region body
PF: predicated region fallthrough
CT: control target
= control target key end

     0   :  { %6 = vsyncpa [#allocation3], 0  ;;  %s112_s0 = inlined_call_operand.hbm [shape: f32[3,1024], index: 0, kind: input, shape index: {}]   ;;  %s113_s1 = inlined_call_operand.hbm [shape: f32[3,1024], index: 1, kind: output, shape index: {}]  }
   0x1   :  { %7 = vsyncpa [#allocation4], 0  ;;  %s94_s6 = smov [#allocation2]  }
   0x2   :  { %s14_s7 = sshll.u32 %s94_s6, 4  ;;  %s15_s7 = int_to_ptr.vmem [resolvable:$true] %s14_s7 }
   0x3   :  { %s58_s8 = scalar_lea.vmem %s15_s7, 512  ;;  %p63_p1 = scmp.lt.s32.totalorder %s15_s7, %s15_s7 }
   0x4   :  { %p59_p0 = scmp.ne.s32.totalorder %s15_s7, %s58_s8  ;;  %p64_p2 = scmp.lt.s32.totalorder %s58_s8, %s58_s8 }
   0x6   :  { %p65_p3 = por %p64_p2, %p63_p1 }
   0x8   :  { %p66_p4 = pnand %p65_p3, %p59_p0 }
   0xa   :  { %69 = shalt.err (!%p66_p4)
}
   0xb   :  { %17 = dma.hbm_to_vmem [thread:$0]  %s112_s0, 512, %s15_s7, [#allocation3]  }
   0xc   :  { %90 = dma.done.wait [#allocation3], 512  }
   0xd   :  { %91 = vsyncadd [#allocation3], 4294966784  ;;  %s95_s11 = smov [#allocation5]   ;;  %v21_v0 = vld [vmem:[#allocation2] sm:$0x77] }
   0xe   :  { %s39_s12 = sshll.u32 %s95_s11, 4  ;;  %v22_v1 = vld [vmem:[#allocation2 + $0x8] sm:$0x77]  ;;  %v23_v2 = vld [vmem:[#allocation2 + $0x10] sm:$0x77]  ;;  %s40_s12 = int_to_ptr.vmem [resolvable:$true] %s39_s12 }
   0xf   :  { %v25_v3 = vmul.f32 8.333333, %v21_v0  ;;  %v26_v4 = vmul.f32 8.333333, %v22_v1  ;;  %v27_v5 = vmul.f32 8.333333, %v23_v2  ;;  %p75_p6 = scmp.lt.s32.totalorder %s40_s12, %s40_s12 }
  0x10   :  { %v24_v6 = vld [vmem:[#allocation2 + $0x18] sm:$0x77]  ;;  %s70_s13 = scalar_lea.vmem %s40_s12, 512 }
  0x11   :  { %29 = vst [vmem:[#allocation5] sm:$0x77] %v25_v3  ;;  %30 = vst [vmem:[#allocation5 + $0x8] sm:$0x77] %v26_v4  ;;  %v28_v7 = vmul.f32 8.333333, %v24_v6  ;;  %p71_p5 = scmp.ne.s32.totalorder %s40_s12, %s70_s13  ;;  %p76_p7 = scmp.lt.s32.totalorder %s70_s13, %s70_s13 }
  0x12   :  { %31 = vst [vmem:[#allocation5 + $0x10] sm:$0x77] %v27_v5 }
  0x13   :  { %32 = vst [vmem:[#allocation5 + $0x18] sm:$0x77] %v28_v7  ;;  %p77_p8 = por %p76_p7, %p75_p6 }
  0x15   :  { %p78_p9 = pnand %p77_p8, %p71_p5 }
  0x17   :  { %81 = shalt.err (!%p78_p9)
}
  0x18   :  { %42 = dma.vmem_to_hbm [thread:$0]  %s40_s12, 512, %s113_s1, [#allocation4]  }
  0x19   :  { %92 = dma.done.wait [#allocation4], 512  }
  0x1a   :  { %93 = vsyncadd [#allocation4], 4294966784 }
  0x1b   :  { %46 = vsyncpa [#allocation3], 1 }
  0x1c   :  { %47 = vsyncpa [#allocation4], 1 }

</bundles_post_ra>
